<compile_context>
chip_gen: v7x
topology: tpu7x:2x2x1
jax: 0.10.0
libtpu: 0.0.40
codegen_flags: <defaults>
</compile_context>

<pallas_src>
import math

import jax
import jax.numpy as jnp
from jax.experimental import pallas as pl
from jax.experimental.pallas import tpu as pltpu


def _normalize_kernel(x_ref, params_ref, o_ref):
    # x_ref, o_ref : (TM, TN) VMEM tile
    # params_ref   : (TM, 2) grid-resident block; lane 0 = scale, lane 1 = bias
    scale = params_ref[:, 0:1]
    bias = params_ref[:, 1:2]
    o_ref[...] = (x_ref[...] * scale + bias).astype(o_ref.dtype)


def transform_layer(x, mean, std, apply_norm=True, donate_input=False):
    """Equivalent of TransformLayer.forward.

    x:    (B, C, H, W)
    mean: (C,) float32
    std:  (C,) float32
    """
    if not apply_norm:
        return x

    B, C, H, W = x.shape
    mean = jnp.asarray(mean, dtype=jnp.float32)
    std = jnp.asarray(std, dtype=jnp.float32)

    # Precompute reciprocal + bias once (C scalars, essentially free).
    inv_std = 1.0 / std
    bias_c = -mean * inv_std

    rows = B * C
    cols = H * W
    x2 = x.reshape(rows, cols)

    itemsize = jnp.dtype(x.dtype).itemsize
    LANE = 128
    SUB = 8

    # Row-block quantum: multiple of both the sublane tile (8) and the channel
    # period (C), so a single-period param block matches every row block.
    period_q = math.lcm(SUB, C)

    # ~4 MiB tile budget per the review (amortizes the ~0.35 us/step overhead
    # while 4 stream buffers stay well under every generation's VMEM).
    target_bytes = 4 * 1024 * 1024
    target_elems = max(1, target_bytes // itemsize)

    # Minimum row block we are willing to use.
    min_tm = rows if rows < period_q else period_q

    # Lane chunking: take whole rows when even the minimal row block fits the
    # budget; otherwise chunk the lane axis in multiples of 128.
    if min_tm * cols <= target_elems or cols <= LANE:
        tn = cols
    else:
        tn = max(LANE, (target_elems // min_tm) // LANE * LANE)
        if tn >= cols:
            tn = cols

    # Row sizing: grow the row block (in multiples of period_q) only when the
    # lane axis is untiled; otherwise keep it minimal.
    if tn == cols and rows > min_tm:
        tm = (target_elems // max(1, cols)) // period_q * period_q
        tm = max(min_tm, min(tm, rows))
    else:
        tm = min_tm

    # Megacore (v7x): make sure there are >= 2 grid steps when rows allow it,
    # so both TensorCores get a share of the streaming work.
    n_i = pl.cdiv(rows, tm)
    n_j = pl.cdiv(cols, tn)
    if n_i * n_j < 2 and rows >= 2 * period_q:
        tm = max(period_q, (rows // 2) // period_q * period_q)
        n_i = pl.cdiv(rows, tm)

    grid = (n_i, pl.cdiv(cols, tn))

    # Grid-resident single-period params: tm is always a multiple of C
    # (either a multiple of period_q, or the full extent rows = B*C).
    reps = tm // C
    params = jnp.stack([jnp.tile(inv_std, reps), jnp.tile(bias_c, reps)], axis=1)  # (tm, 2)

    extra_kwargs = {}
    if donate_input:
        extra_kwargs["input_output_aliases"] = {0: 0}

    out2 = pl.pallas_call(
        _normalize_kernel,
        out_shape=jax.ShapeDtypeStruct((rows, cols), x.dtype),
        grid_spec=pl.GridSpec(
            grid=grid,
            in_specs=[
                pl.BlockSpec((tm, tn), lambda i, j: (i, j)),   # x tiles
                pl.BlockSpec((tm, 2), lambda i, j: (0, 0)),    # grid-resident params
            ],
            out_specs=pl.BlockSpec((tm, tn), lambda i, j: (i, j)),
        ),
        compiler_params=pltpu.CompilerParams(
            dimension_semantics=("parallel", "parallel"),
            # 4 x ~4 MiB stream buffers + small param buffers; 48 MiB leaves
            # headroom on v5e/v6e (128 MiB phys) and under v7x's 64 MiB phys.
            vmem_limit_bytes=48 * 1024 * 1024,
        ),
        **extra_kwargs,
    )(x2, params)

    return out2.reshape(B, C, H, W)


if __name__ == "__main__":
    key = jax.random.PRNGKey(0)
    B, C, H, W = 2, 4, 16, 16

    x = jax.random.normal(key, (B, C, H, W), dtype=jnp.float32)

    # Deterministic per-channel normalization parameters (module __init__ args).
    mean = jnp.array([0.1, 0.2, 0.3, 0.4], dtype=jnp.float32)
    std = jnp.array([0.5, 0.6, 0.7, 0.8], dtype=jnp.float32)

    out = transform_layer(x, mean, std, apply_norm=True)
    out = jax.block_until_ready(out)

    # Reference check against plain-JAX broadcasted normalization.
    ref = (x - mean[None, :, None, None]) / std[None, :, None, None]
    assert out.shape == x.shape
    assert jnp.allclose(out, ref, atol=1e-5, rtol=1e-5)

    # apply=False path: identity.
    out_noop = transform_layer(x, mean, std, apply_norm=False)
    assert jnp.array_equal(out_noop, x)

    print("KERNEL_OK")
</pallas_src>

<mosaic_0001>
module attributes {stable_mosaic.version = 11 : i64} {
  func.func @_normalize_kernel(%arg0: i32, %arg1: i32, %arg2: memref<8x256xf32, #tpu.memory_space<vmem>>, %arg3: memref<8x2xf32, #tpu.memory_space<vmem>>, %arg4: memref<8x256xf32, #tpu.memory_space<vmem>>) attributes {dimension_semantics = [#tpu.dimension_semantics<parallel>, #tpu.dimension_semantics<parallel>], iteration_bounds = array<i64: 1, 1>, scalar_prefetch = 0 : i64, scratch_operands = 0 : i64, tpu.core_type = #tpu.core_type<tc>, window_params = [{transform_indices = @transform_0, window_bounds = array<i64: 8, 256>}, {pipeline_mode = #tpu.pipeline_mode<synchronous>, transform_indices = @transform_1, window_bounds = array<i64: 8, 2>}, {transform_indices = @transform_2, window_bounds = array<i64: 8, 256>}]} {
    %c0 = arith.constant 0 : index
    %c0_0 = arith.constant 0 : index
    %0 = vector.load %arg3[%c0, %c0_0] : memref<8x2xf32, #tpu.memory_space<vmem>>, vector<8x1xf32>
    %c0_1 = arith.constant 0 : index
    %c1 = arith.constant 1 : index
    %1 = vector.load %arg3[%c0_1, %c1] : memref<8x2xf32, #tpu.memory_space<vmem>>, vector<8x1xf32>
    %c0_2 = arith.constant 0 : index
    %c0_3 = arith.constant 0 : index
    %2 = vector.load %arg2[%c0_2, %c0_3] : memref<8x256xf32, #tpu.memory_space<vmem>>, vector<8x256xf32>
    %3 = vector.broadcast %0 : vector<8x1xf32> to vector<8x256xf32>
    %4 = arith.mulf %2, %3 : vector<8x256xf32>
    %5 = vector.broadcast %1 : vector<8x1xf32> to vector<8x256xf32>
    %6 = arith.addf %4, %5 : vector<8x256xf32>
    %c0_4 = arith.constant 0 : index
    %c0_5 = arith.constant 0 : index
    %7 = vector.load %arg4[%c0_4, %c0_5] : memref<8x256xf32, #tpu.memory_space<vmem>>, vector<8x256xf32>
    tpu.vector_store %arg4[%c0_4, %c0_5], %6 {strides = array<i32>} : memref<8x256xf32, #tpu.memory_space<vmem>>, vector<8x256xf32>,
    return
  }
  func.func @transform_0(%arg0: i32, %arg1: i32) -> (i32, i32) {
    %c0_i32 = arith.constant 0 : i32
    return %arg0, %arg1 : i32, i32
  }
  func.func @transform_1(%arg0: i32, %arg1: i32) -> (i32, i32) {
    %c0_i32 = arith.constant 0 : i32
    %c0_i32_0 = arith.constant 0 : i32
    %c0_i32_1 = arith.constant 0 : i32
    return %c0_i32, %c0_i32_0 : i32, i32
  }
  func.func @transform_2(%arg0: i32, %arg1: i32) -> (i32, i32) {
    %c0_i32 = arith.constant 0 : i32
    return %arg0, %arg1 : i32, i32
  }
}

</mosaic_0001>

<bundles_post_ra>
// kernel: tpu_custom_call.1
= control target key start
LH: loop header
LB: loop body
LE: loop exit
PB: predicated region body
PF: predicated region fallthrough
CT: control target
= control target key end

     0   :  { %7 = vsyncpa [#allocation3], 0  ;;  %s157_s0 = inlined_call_operand.hbm [shape: f32[8,256], index: 0, kind: input, shape index: {}]   ;;  %s158_s1 = inlined_call_operand.vmem [shape: f32[8,2], index: 1, kind: input, shape index: {}]   ;;  %s159_s2 = inlined_call_operand.hbm [shape: f32[8,256], index: 2, kind: output, shape index: {}]  }
   0x1   :  { %8 = vsyncpa [#allocation4], 0  ;;  %s111_s9 = smov [#allocation2]   ;;  %s63_s13 = scalar_lea.hbm %s157_s0, 256 }
   0x2   :  { %s15_s10 = sshll.u32 %s111_s9, 4  ;;  %p64_p0 = scmp.ne.s32.totalorder %s157_s0, %s63_s13  ;;  %s16_s10 = int_to_ptr.vmem [resolvable:$true] %s15_s10 }
   0x3   :  { %p67_p1 = scmp.lt.u32.totalorder %s63_s13, %s157_s0 }
   0x5   :  { %p69_p2 = pnand %p67_p1, %p64_p0 }
   0x7   :  { %72 = shalt.err (!%p69_p2)
}
   0x8   :  { %s73_s18 = scalar_lea.vmem %s16_s10, 256  ;;  %p78_p4 = scmp.lt.s32.totalorder %s16_s10, %s16_s10 }
   0x9   :  { %p74_p3 = scmp.ne.s32.totalorder %s16_s10, %s73_s18  ;;  %p79_p5 = scmp.lt.s32.totalorder %s73_s18, %s73_s18 }
   0xb   :  { %p80_p6 = por %p79_p5, %p78_p4 }
   0xd   :  { %p81_p7 = pnand %p80_p6, %p74_p3 }
   0xf   :  { %84 = shalt.err (!%p81_p7)
}
  0x10   :  { %18 = dma.hbm_to_vmem [thread:$0]  %s157_s0, 256, %s16_s10, [#allocation3]  }
  0x11   :  { %107 = dma.done.wait [#allocation3], 256  }
  0x12   :  { %108 = vsyncadd [#allocation3], 4294967040  ;;  %v112_v0 = vmov 0   ;;  %v24_v1 = vld [vmem:[%s158_s1] sm:$0xff]  ;;  %v113_v2 = vmov 1   ;;  %v26_v5 = vld [vmem:[#allocation2 + $0x8] sm:$0xff] }
  0x13   :  { %61 = vset.pattern.permute.xlu0 %v112_v0  ;;  %v25_v4 = vld [vmem:[#allocation2] sm:$0xff]  ;;  %s114_s23 = smov [#allocation5]  }
  0x14   :  { %29 = vperm.xlu0 %61, %v24_v1   ;;  %s48_s24 = sshll.u32 %s114_s23, 4  ;;  %s49_s24 = int_to_ptr.vmem [resolvable:$true] %s48_s24 }
  0x15   :  { %s85_s0 = scalar_lea.vmem %s49_s24, 256  ;;  %p90_p9 = scmp.lt.s32.totalorder %s49_s24, %s49_s24 }
  0x16   :  { %p86_p8 = scmp.ne.s32.totalorder %s49_s24, %s85_s0  ;;  %p91_p10 = scmp.lt.s32.totalorder %s85_s0, %s85_s0 }
  0x18   :  { %62 = vset.pattern.permute.xlu0 %v113_v2  ;;  %p92_p11 = por %p91_p10, %p90_p9 }
  0x19   :  { %35 = vperm.xlu0 %62, %v24_v1  }
  0x1a   :  { %p93_p12 = pnand %p92_p11, %p86_p8 }
  0x93   :  { %v30_v3 = vpop.permute.xlu0 %29 }
  0x94   :  { %v32_v6 = vmul.f32 %v30_v3, %v25_v4  ;;  %v33_v7 = vmul.f32 %v30_v3, %v26_v5 }
  0x98   :  { %v36_v8 = vpop.permute.xlu0 %35 }
  0x99   :  { %v38_v9 = vadd.f32 %v36_v8, %v32_v6  ;;  %v39_v10 = vadd.f32 %v36_v8, %v33_v7 }
  0x9b   :  { %40 = vst [vmem:[#allocation5] sm:$0xff] %v38_v9  ;;  %41 = vst [vmem:[#allocation5 + $0x8] sm:$0xff] %v39_v10 }
  0x9c   :  { %96 = shalt.err (!%p93_p12)
}
  0x9d   :  { %s97_s26 = scalar_lea.hbm %s159_s2, 256 }
  0x9e   :  { %p98_p13 = scmp.ne.s32.totalorder %s159_s2, %s97_s26  ;;  %p101_p0 = scmp.lt.u32.totalorder %s97_s26, %s159_s2 }
  0xa0   :  { %p103_p1 = pnand %p101_p0, %p98_p13 }
  0xa2   :  { %106 = shalt.err (!%p103_p1)
}
  0xa3   :  { %51 = dma.vmem_to_hbm [thread:$0]  %s49_s24, 256, %s159_s2, [#allocation4]  }
  0xa4   :  { %109 = dma.done.wait [#allocation4], 256  }
  0xa5   :  { %110 = vsyncadd [#allocation4], 4294967040 }
  0xa6   :  { %55 = vsyncpa [#allocation3], 1 }
  0xa7   :  { %56 = vsyncpa [#allocation4], 1 }

</bundles_post_ra>
